<compile_context>
chip_gen: v7x
topology: tpu7x:2x2x1
jax: 0.10.0
libtpu: 0.0.40
codegen_flags: <defaults>
</compile_context>

<pallas_src>
import numpy as np
import jax
import jax.numpy as jnp
from jax import lax
from jax.experimental import pallas as pl
from jax.experimental.pallas import tpu as pltpu


# ----------------------------------------------------------------------------
# Pallas kernel
# ----------------------------------------------------------------------------
def _img_encode_kernel(x4_ref, s_ref, m1_ref, b1_ref, m2_ref, b2_ref,
                       cb_ref, bc_ref, o_ref):
    # x4_ref : (4, R, Wh*Cin)        four 2x2-offset input slabs (R = B*Hh rows)
    # s_ref  : (3, R, R)             height-shift matrices (banded, kron'd over batch)
    # m1_ref : (3, Wh*Cin,  Wh*Cout) width-Toeplitz conv1 weights (BN folded)
    # b1_ref : (1, Wh*Cout)
    # m2_ref : (3, Wh*Cout, Wh*Cout) width-Toeplitz conv2 weights (BN folded)
    # b2_ref : (1, Wh*Cout)
    # cb_ref : (Wh*Cin, Wh*Cout)     block-diag 1x1 residual conv (BN folded) or identity
    # bc_ref : (1, Wh*Cout)
    # o_ref  : (R, Wh*Cout)

    # --- MaxPool2d(2): elementwise max of the four offset slabs (VPU) ---
    p = jnp.maximum(jnp.maximum(x4_ref[0], x4_ref[1]),
                    jnp.maximum(x4_ref[2], x4_ref[3]))            # (R, Wh*Cin)

    def conv3x3_bn_relu(inp, m_ref, b_ref):
        # 3x3 'SAME' conv + folded BN + ReLU as 6 small MXU matmuls.
        acc = None
        for dy in range(3):
            t = jnp.dot(inp, m_ref[dy], preferred_element_type=jnp.float32)
            t = jnp.dot(s_ref[dy], t, preferred_element_type=jnp.float32)
            acc = t if acc is None else acc + t
        return jnp.maximum(acc + b_ref[...], 0.0)

    h1 = conv3x3_bn_relu(p, m1_ref, b1_ref)        # (R, Wh*Cout)
    h2 = conv3x3_bn_relu(h1, m2_ref, b2_ref)       # (R, Wh*Cout)

    # --- residual branch: 1x1 conv + folded BN (identity when Cin == Cout) ---
    res = jnp.dot(p, cb_ref[...], preferred_element_type=jnp.float32) + bc_ref[...]

    # single lane-dense full-tile store
    o_ref[...] = h2 + res


# ----------------------------------------------------------------------------
# Parameter construction (synthetic, deterministic) + eval-mode BN folding
# ----------------------------------------------------------------------------
def make_params(key, in_ch, out_ch, eps=1e-5):
    ks = jax.random.split(key, 17)
    # conv1 + bn1
    w1 = jax.random.normal(ks[0], (out_ch, in_ch, 3, 3), jnp.float32) * 0.2
    b1 = jax.random.normal(ks[1], (out_ch,), jnp.float32) * 0.1
    g1 = jax.random.uniform(ks[2], (out_ch,), jnp.float32, minval=0.5, maxval=1.5)
    be1 = jax.random.normal(ks[3], (out_ch,), jnp.float32) * 0.1
    m1 = jax.random.normal(ks[4], (out_ch,), jnp.float32) * 0.1
    v1 = jax.random.uniform(ks[5], (out_ch,), jnp.float32, minval=0.5, maxval=1.5)
    # conv2 + bn2
    w2 = jax.random.normal(ks[6], (out_ch, out_ch, 3, 3), jnp.float32) * 0.2
    b2 = jax.random.normal(ks[7], (out_ch,), jnp.float32) * 0.1
    g2 = jax.random.uniform(ks[8], (out_ch,), jnp.float32, minval=0.5, maxval=1.5)
    be2 = jax.random.normal(ks[9], (out_ch,), jnp.float32) * 0.1
    m2 = jax.random.normal(ks[10], (out_ch,), jnp.float32) * 0.1
    v2 = jax.random.uniform(ks[11], (out_ch,), jnp.float32, minval=0.5, maxval=1.5)
    # channel_conv (1x1, no bias) + its BN
    wc = jax.random.normal(ks[12], (out_ch, in_ch, 1, 1), jnp.float32) * 0.2
    gc = jax.random.uniform(ks[13], (out_ch,), jnp.float32, minval=0.5, maxval=1.5)
    bec = jax.random.normal(ks[14], (out_ch,), jnp.float32) * 0.1
    mc = jax.random.normal(ks[15], (out_ch,), jnp.float32) * 0.1
    vc = jax.random.uniform(ks[16], (out_ch,), jnp.float32, minval=0.5, maxval=1.5)

    # fold eval-mode BN:  out = conv(x)*s + (b - mean)*s + beta
    s1 = g1 / jnp.sqrt(v1 + eps)
    w1_hwio = jnp.transpose(w1, (2, 3, 1, 0)) * s1          # (3,3,Cin,Cout)
    b1_f = (b1 - m1) * s1 + be1
    s2 = g2 / jnp.sqrt(v2 + eps)
    w2_hwio = jnp.transpose(w2, (2, 3, 1, 0)) * s2          # (3,3,Cout,Cout)
    b2_f = (b2 - m2) * s2 + be2
    sc = gc / jnp.sqrt(vc + eps)
    wc_io = jnp.transpose(wc[:, :, 0, 0], (1, 0)) * sc      # (Cin,Cout)
    bc_f = bec - mc * sc
    return w1_hwio, b1_f, w2_hwio, b2_f, wc_io, bc_f


# ----------------------------------------------------------------------------
# Static weight / index-matrix packing (one-time preprocessing)
# ----------------------------------------------------------------------------
def _width_toeplitz(w_hwio, Wdim):
    """(3,3,Ci,Co) -> (3, Wdim*Ci, Wdim*Co); 'SAME' zero padding baked into the band."""
    w = np.asarray(w_hwio, np.float32)
    Ci, Co = w.shape[2], w.shape[3]
    M = np.zeros((3, Wdim * Ci, Wdim * Co), np.float32)
    for dy in range(3):
        for dx in range(3):
            for wo in range(Wdim):
                wi = wo + dx - 1
                if 0 <= wi < Wdim:
                    M[dy, wi * Ci:(wi + 1) * Ci, wo * Co:(wo + 1) * Co] = w[dy, dx]
    return jnp.asarray(M)


def _height_shift(Hdim, nbatch_block):
    """Banded 0/1 shift matrices for the 3 vertical taps, kron'd over the batch block."""
    S = np.zeros((3, Hdim, Hdim), np.float32)
    for dy in range(3):
        for ho in range(Hdim):
            hi = ho + dy - 1
            if 0 <= hi < Hdim:
                S[dy, ho, hi] = 1.0
    Sb = np.stack([np.kron(np.eye(nbatch_block, dtype=np.float32), S[dy])
                   for dy in range(3)], axis=0)
    return jnp.asarray(Sb)


# ----------------------------------------------------------------------------
# Forward wrapper
# ----------------------------------------------------------------------------
def img_encode_block_forward(x_nchw, params, batch_block=None):
    w1f, b1f, w2f, b2f, wcf, bcf = params
    N, Cin, H, W = x_nchw.shape
    Cout = w1f.shape[-1]
    assert H % 2 == 0 and W % 2 == 0, "MaxPool2d(2) path assumes even spatial dims"
    Hh, Wh = H // 2, W // 2
    B = N if batch_block is None else batch_block
    assert N % B == 0
    R = B * Hh

    # ---- layout glue: NCHW -> four lane-dense 2x2-offset slabs (channels on lanes)
    xh = jnp.transpose(x_nchw, (0, 2, 3, 1)).astype(jnp.float32)        # (N,H,W,Cin)
    slabs = [xh[:, i::2, j::2, :].reshape(N * Hh, Wh * Cin)
             for i in (0, 1) for j in (0, 1)]
    x4 = jnp.stack(slabs, axis=0)                                       # (4, N*Hh, Wh*Cin)

    # ---- pack conv weights for the MXU formulation ----
    M1 = _width_toeplitz(w1f, Wh)                     # (3, Wh*Cin,  Wh*Cout)
    M2 = _width_toeplitz(w2f, Wh)                     # (3, Wh*Cout, Wh*Cout)
    S = _height_shift(Hh, B)                          # (3, R, R)
    if Cin != Cout:
        Cb = jnp.asarray(np.kron(np.eye(Wh, dtype=np.float32),
                                 np.asarray(wcf, np.float32)))          # (Wh*Cin, Wh*Cout)
        bct = jnp.tile(jnp.asarray(bcf, jnp.float32), Wh)[None, :]
    else:
        Cb = jnp.eye(Wh * Cin, dtype=jnp.float32)     # residual passes through unchanged
        bct = jnp.zeros((1, Wh * Cout), jnp.float32)
    b1t = jnp.tile(b1f.astype(jnp.float32), Wh)[None, :]                # (1, Wh*Cout)
    b2t = jnp.tile(b2f.astype(jnp.float32), Wh)[None, :]

    grid_spec = pltpu.PrefetchScalarGridSpec(
        num_scalar_prefetch=0,
        grid=(N // B,),
        in_specs=[
            pl.BlockSpec((4, R, Wh * Cin), lambda n: (0, n, 0)),
            pl.BlockSpec((3, R, R), lambda n: (0, 0, 0)),
            pl.BlockSpec((3, Wh * Cin, Wh * Cout), lambda n: (0, 0, 0)),
            pl.BlockSpec((1, Wh * Cout), lambda n: (0, 0)),
            pl.BlockSpec((3, Wh * Cout, Wh * Cout), lambda n: (0, 0, 0)),
            pl.BlockSpec((1, Wh * Cout), lambda n: (0, 0)),
            pl.BlockSpec((Wh * Cin, Wh * Cout), lambda n: (0, 0)),
            pl.BlockSpec((1, Wh * Cout), lambda n: (0, 0)),
        ],
        out_specs=pl.BlockSpec((R, Wh * Cout), lambda n: (n, 0)),
    )

    out2d = pl.pallas_call(
        _img_encode_kernel,
        out_shape=jax.ShapeDtypeStruct((N * Hh, Wh * Cout), jnp.float32),
        grid_spec=grid_spec,
        compiler_params=pltpu.CompilerParams(
            dimension_semantics=("parallel",)),       # batch blocks are independent
    )(x4, S, M1, b1t, M2, b2t, Cb, bct)

    out = out2d.reshape(N, Hh, Wh, Cout)
    return jnp.transpose(out, (0, 3, 1, 2))           # back to NCHW like PyTorch


# ----------------------------------------------------------------------------
# Pure-JAX reference of the same (BN-folded, eval-mode) forward pass
# ----------------------------------------------------------------------------
def img_encode_block_reference(x_nchw, params):
    w1f, b1f, w2f, b2f, wcf, bcf = params
    N, Cin, H, W = x_nchw.shape
    Cout = w1f.shape[-1]
    hp = lax.Precision.HIGHEST
    dn = ('NHWC', 'HWIO', 'NHWC')

    y = jnp.transpose(x_nchw, (0, 2, 3, 1)).astype(jnp.float32)
    p = y.reshape(N, H // 2, 2, W // 2, 2, Cin).max(axis=(2, 4))        # MaxPool2d(2)
    h = lax.conv_general_dilated(p, w1f, (1, 1), 'SAME',
                                 dimension_numbers=dn, precision=hp) + b1f
    h = jnp.maximum(h, 0.0)
    h = lax.conv_general_dilated(h, w2f, (1, 1), 'SAME',
                                 dimension_numbers=dn, precision=hp) + b2f
    h = jnp.maximum(h, 0.0)
    if Cin != Cout:
        res = jnp.einsum('nhwc,cd->nhwd', p, wcf, precision=hp) + bcf
    else:
        res = p
    out = h + res
    return jnp.transpose(out, (0, 3, 1, 2))


if __name__ == "__main__":
    key = jax.random.PRNGKey(0)
    kx, kp = jax.random.split(key)
    N, in_ch, out_ch, H, W = 2, 4, 8, 16, 16

    x = jax.random.normal(kx, (N, in_ch, H, W), jnp.float32)   # NCHW like PyTorch
    params = make_params(kp, in_ch, out_ch)

    out = img_encode_block_forward(x, params)
    out = jax.block_until_ready(out)

    assert out.shape == (N, out_ch, H // 2, W // 2), out.shape
    ref = img_encode_block_reference(x, params)
    np.testing.assert_allclose(np.asarray(out), np.asarray(ref), rtol=5e-4, atol=5e-4)
    print("KERNEL_OK")
</pallas_src>

<mosaic_0001>
module attributes {stable_mosaic.version = 11 : i64} {
  func.func @_img_encode_kernel(%arg0: i32, %arg1: memref<4x16x32xf32, #tpu.memory_space<vmem>>, %arg2: memref<3x16x16xf32, #tpu.memory_space<vmem>>, %arg3: memref<3x32x64xf32, #tpu.memory_space<vmem>>, %arg4: memref<1x64xf32, #tpu.memory_space<vmem>>, %arg5: memref<3x64x64xf32, #tpu.memory_space<vmem>>, %arg6: memref<1x64xf32, #tpu.memory_space<vmem>>, %arg7: memref<32x64xf32, #tpu.memory_space<vmem>>, %arg8: memref<1x64xf32, #tpu.memory_space<vmem>>, %arg9: memref<16x64xf32, #tpu.memory_space<vmem>>) attributes {dimension_semantics = [#tpu.dimension_semantics<parallel>], iteration_bounds = array<i64: 1>, scalar_prefetch = 0 : i64, scratch_operands = 0 : i64, tpu.core_type = #tpu.core_type<tc>, window_params = [{transform_indices = @transform_0, window_bounds = array<i64: 4, 16, 32>}, {pipeline_mode = #tpu.pipeline_mode<synchronous>, transform_indices = @transform_1, window_bounds = array<i64: 3, 16, 16>}, {pipeline_mode = #tpu.pipeline_mode<synchronous>, transform_indices = @transform_2, window_bounds = array<i64: 3, 32, 64>}, {pipeline_mode = #tpu.pipeline_mode<synchronous>, transform_indices = @transform_3, window_bounds = array<i64: 1, 64>}, {pipeline_mode = #tpu.pipeline_mode<synchronous>, transform_indices = @transform_4, window_bounds = array<i64: 3, 64, 64>}, {pipeline_mode = #tpu.pipeline_mode<synchronous>, transform_indices = @transform_5, window_bounds = array<i64: 1, 64>}, {pipeline_mode = #tpu.pipeline_mode<synchronous>, transform_indices = @transform_6, window_bounds = array<i64: 32, 64>}, {pipeline_mode = #tpu.pipeline_mode<synchronous>, transform_indices = @transform_7, window_bounds = array<i64: 1, 64>}, {transform_indices = @transform_8, window_bounds = array<i64: 16, 64>}]} {
    %c0 = arith.constant 0 : index
    %c0_0 = arith.constant 0 : index
    %c0_1 = arith.constant 0 : index
    %0 = vector.load %arg1[%c0, %c0_0, %c0_1] : memref<4x16x32xf32, #tpu.memory_space<vmem>>, vector<1x16x32xf32>
    %1 = vector.shape_cast %0 : vector<1x16x32xf32> to vector<16x32xf32>
    %c1 = arith.constant 1 : index
    %c0_2 = arith.constant 0 : index
    %c0_3 = arith.constant 0 : index
    %2 = vector.load %arg1[%c1, %c0_2, %c0_3] : memref<4x16x32xf32, #tpu.memory_space<vmem>>, vector<1x16x32xf32>
    %3 = vector.shape_cast %2 : vector<1x16x32xf32> to vector<16x32xf32>
    %4 = arith.maximumf %1, %3 : vector<16x32xf32>
    %c2 = arith.constant 2 : index
    %c0_4 = arith.constant 0 : index
    %c0_5 = arith.constant 0 : index
    %5 = vector.load %arg1[%c2, %c0_4, %c0_5] : memref<4x16x32xf32, #tpu.memory_space<vmem>>, vector<1x16x32xf32>
    %6 = vector.shape_cast %5 : vector<1x16x32xf32> to vector<16x32xf32>
    %c3 = arith.constant 3 : index
    %c0_6 = arith.constant 0 : index
    %c0_7 = arith.constant 0 : index
    %7 = vector.load %arg1[%c3, %c0_6, %c0_7] : memref<4x16x32xf32, #tpu.memory_space<vmem>>, vector<1x16x32xf32>
    %8 = vector.shape_cast %7 : vector<1x16x32xf32> to vector<16x32xf32>
    %9 = arith.maximumf %6, %8 : vector<16x32xf32>
    %10 = arith.maximumf %4, %9 : vector<16x32xf32>
    %c0_8 = arith.constant 0 : index
    %c0_9 = arith.constant 0 : index
    %c0_10 = arith.constant 0 : index
    %11 = vector.load %arg3[%c0_8, %c0_9, %c0_10] : memref<3x32x64xf32, #tpu.memory_space<vmem>>, vector<1x32x64xf32>
    %12 = vector.shape_cast %11 : vector<1x32x64xf32> to vector<32x64xf32>
    %cst = arith.constant dense<0.000000e+00> : vector<16x64xf32>
    %13 = tpu.matmul %10, %12, %cst {dimension_numbers = #tpu.dot_dimension_numbers<[1], [0], [0], [1], [0, 0, 1, 1], [], []>} : vector<16x32xf32>, vector<32x64xf32>, vector<16x64xf32> -> vector<16x64xf32>
    %c0_11 = arith.constant 0 : index
    %c0_12 = arith.constant 0 : index
    %c0_13 = arith.constant 0 : index
    %14 = vector.load %arg2[%c0_11, %c0_12, %c0_13] : memref<3x16x16xf32, #tpu.memory_space<vmem>>, vector<1x16x16xf32>
    %15 = vector.shape_cast %14 : vector<1x16x16xf32> to vector<16x16xf32>
    %cst_14 = arith.constant dense<0.000000e+00> : vector<16x64xf32>
    %16 = tpu.matmul %15, %13, %cst_14 {dimension_numbers = #tpu.dot_dimension_numbers<[1], [0], [0], [1], [0, 0, 1, 1], [], []>} : vector<16x16xf32>, vector<16x64xf32>, vector<16x64xf32> -> vector<16x64xf32>
    %c1_15 = arith.constant 1 : index
    %c0_16 = arith.constant 0 : index
    %c0_17 = arith.constant 0 : index
    %17 = vector.load %arg3[%c1_15, %c0_16, %c0_17] : memref<3x32x64xf32, #tpu.memory_space<vmem>>, vector<1x32x64xf32>
    %18 = vector.shape_cast %17 : vector<1x32x64xf32> to vector<32x64xf32>
    %cst_18 = arith.constant dense<0.000000e+00> : vector<16x64xf32>
    %19 = tpu.matmul %10, %18, %cst_18 {dimension_numbers = #tpu.dot_dimension_numbers<[1], [0], [0], [1], [0, 0, 1, 1], [], []>} : vector<16x32xf32>, vector<32x64xf32>, vector<16x64xf32> -> vector<16x64xf32>
    %c1_19 = arith.constant 1 : index
    %c0_20 = arith.constant 0 : index
    %c0_21 = arith.constant 0 : index
    %20 = vector.load %arg2[%c1_19, %c0_20, %c0_21] : memref<3x16x16xf32, #tpu.memory_space<vmem>>, vector<1x16x16xf32>
    %21 = vector.shape_cast %20 : vector<1x16x16xf32> to vector<16x16xf32>
    %cst_22 = arith.constant dense<0.000000e+00> : vector<16x64xf32>
    %22 = tpu.matmul %21, %19, %cst_22 {dimension_numbers = #tpu.dot_dimension_numbers<[1], [0], [0], [1], [0, 0, 1, 1], [], []>} : vector<16x16xf32>, vector<16x64xf32>, vector<16x64xf32> -> vector<16x64xf32>
    %23 = arith.addf %16, %22 : vector<16x64xf32>
    %c2_23 = arith.constant 2 : index
    %c0_24 = arith.constant 0 : index
    %c0_25 = arith.constant 0 : index
    %24 = vector.load %arg3[%c2_23, %c0_24, %c0_25] : memref<3x32x64xf32, #tpu.memory_space<vmem>>, vector<1x32x64xf32>
    %25 = vector.shape_cast %24 : vector<1x32x64xf32> to vector<32x64xf32>
    %cst_26 = arith.constant dense<0.000000e+00> : vector<16x64xf32>
    %26 = tpu.matmul %10, %25, %cst_26 {dimension_numbers = #tpu.dot_dimension_numbers<[1], [0], [0], [1], [0, 0, 1, 1], [], []>} : vector<16x32xf32>, vector<32x64xf32>, vector<16x64xf32> -> vector<16x64xf32>
    %c2_27 = arith.constant 2 : index
    %c0_28 = arith.constant 0 : index
    %c0_29 = arith.constant 0 : index
    %27 = vector.load %arg2[%c2_27, %c0_28, %c0_29] : memref<3x16x16xf32, #tpu.memory_space<vmem>>, vector<1x16x16xf32>
    %28 = vector.shape_cast %27 : vector<1x16x16xf32> to vector<16x16xf32>
    %cst_30 = arith.constant dense<0.000000e+00> : vector<16x64xf32>
    %29 = tpu.matmul %28, %26, %cst_30 {dimension_numbers = #tpu.dot_dimension_numbers<[1], [0], [0], [1], [0, 0, 1, 1], [], []>} : vector<16x16xf32>, vector<16x64xf32>, vector<16x64xf32> -> vector<16x64xf32>
    %30 = arith.addf %23, %29 : vector<16x64xf32>
    %c0_31 = arith.constant 0 : index
    %c0_32 = arith.constant 0 : index
    %31 = vector.load %arg4[%c0_31, %c0_32] : memref<1x64xf32, #tpu.memory_space<vmem>>, vector<1x64xf32>
    %32 = vector.broadcast %31 : vector<1x64xf32> to vector<16x64xf32>
    %33 = arith.addf %30, %32 : vector<16x64xf32>
    %cst_33 = arith.constant 0.000000e+00 : f32
    %34 = vector.broadcast %cst_33 : f32 to vector<16x64xf32>
    %35 = arith.maximumf %33, %34 : vector<16x64xf32>
    %c0_34 = arith.constant 0 : index
    %c0_35 = arith.constant 0 : index
    %c0_36 = arith.constant 0 : index
    %36 = vector.load %arg5[%c0_34, %c0_35, %c0_36] : memref<3x64x64xf32, #tpu.memory_space<vmem>>, vector<1x64x64xf32>
    %37 = vector.shape_cast %36 : vector<1x64x64xf32> to vector<64x64xf32>
    %cst_37 = arith.constant dense<0.000000e+00> : vector<16x64xf32>
    %38 = tpu.matmul %35, %37, %cst_37 {dimension_numbers = #tpu.dot_dimension_numbers<[1], [0], [0], [1], [0, 0, 1, 1], [], []>} : vector<16x64xf32>, vector<64x64xf32>, vector<16x64xf32> -> vector<16x64xf32>
    %c0_38 = arith.constant 0 : index
    %c0_39 = arith.constant 0 : index
    %c0_40 = arith.constant 0 : index
    %39 = vector.load %arg2[%c0_38, %c0_39, %c0_40] : memref<3x16x16xf32, #tpu.memory_space<vmem>>, vector<1x16x16xf32>
    %40 = vector.shape_cast %39 : vector<1x16x16xf32> to vector<16x16xf32>
    %cst_41 = arith.constant dense<0.000000e+00> : vector<16x64xf32>
    %41 = tpu.matmul %40, %38, %cst_41 {dimension_numbers = #tpu.dot_dimension_numbers<[1], [0], [0], [1], [0, 0, 1, 1], [], []>} : vector<16x16xf32>, vector<16x64xf32>, vector<16x64xf32> -> vector<16x64xf32>
    %c1_42 = arith.constant 1 : index
    %c0_43 = arith.constant 0 : index
    %c0_44 = arith.constant 0 : index
    %42 = vector.load %arg5[%c1_42, %c0_43, %c0_44] : memref<3x64x64xf32, #tpu.memory_space<vmem>>, vector<1x64x64xf32>
    %43 = vector.shape_cast %42 : vector<1x64x64xf32> to vector<64x64xf32>
    %cst_45 = arith.constant dense<0.000000e+00> : vector<16x64xf32>
    %44 = tpu.matmul %35, %43, %cst_45 {dimension_numbers = #tpu.dot_dimension_numbers<[1], [0], [0], [1], [0, 0, 1, 1], [], []>} : vector<16x64xf32>, vector<64x64xf32>, vector<16x64xf32> -> vector<16x64xf32>
    %c1_46 = arith.constant 1 : index
    %c0_47 = arith.constant 0 : index
    %c0_48 = arith.constant 0 : index
    %45 = vector.load %arg2[%c1_46, %c0_47, %c0_48] : memref<3x16x16xf32, #tpu.memory_space<vmem>>, vector<1x16x16xf32>
    %46 = vector.shape_cast %45 : vector<1x16x16xf32> to vector<16x16xf32>
    %cst_49 = arith.constant dense<0.000000e+00> : vector<16x64xf32>
    %47 = tpu.matmul %46, %44, %cst_49 {dimension_numbers = #tpu.dot_dimension_numbers<[1], [0], [0], [1], [0, 0, 1, 1], [], []>} : vector<16x16xf32>, vector<16x64xf32>, vector<16x64xf32> -> vector<16x64xf32>
    %48 = arith.addf %41, %47 : vector<16x64xf32>
    %c2_50 = arith.constant 2 : index
    %c0_51 = arith.constant 0 : index
    %c0_52 = arith.constant 0 : index
    %49 = vector.load %arg5[%c2_50, %c0_51, %c0_52] : memref<3x64x64xf32, #tpu.memory_space<vmem>>, vector<1x64x64xf32>
    %50 = vector.shape_cast %49 : vector<1x64x64xf32> to vector<64x64xf32>
    %cst_53 = arith.constant dense<0.000000e+00> : vector<16x64xf32>
    %51 = tpu.matmul %35, %50, %cst_53 {dimension_numbers = #tpu.dot_dimension_numbers<[1], [0], [0], [1], [0, 0, 1, 1], [], []>} : vector<16x64xf32>, vector<64x64xf32>, vector<16x64xf32> -> vector<16x64xf32>
    %c2_54 = arith.constant 2 : index
    %c0_55 = arith.constant 0 : index
    %c0_56 = arith.constant 0 : index
    %52 = vector.load %arg2[%c2_54, %c0_55, %c0_56] : memref<3x16x16xf32, #tpu.memory_space<vmem>>, vector<1x16x16xf32>
    %53 = vector.shape_cast %52 : vector<1x16x16xf32> to vector<16x16xf32>
    %cst_57 = arith.constant dense<0.000000e+00> : vector<16x64xf32>
    %54 = tpu.matmul %53, %51, %cst_57 {dimension_numbers = #tpu.dot_dimension_numbers<[1], [0], [0], [1], [0, 0, 1, 1], [], []>} : vector<16x16xf32>, vector<16x64xf32>, vector<16x64xf32> -> vector<16x64xf32>
    %55 = arith.addf %48, %54 : vector<16x64xf32>
    %c0_58 = arith.constant 0 : index
    %c0_59 = arith.constant 0 : index
    %56 = vector.load %arg6[%c0_58, %c0_59] : memref<1x64xf32, #tpu.memory_space<vmem>>, vector<1x64xf32>
    %57 = vector.broadcast %56 : vector<1x64xf32> to vector<16x64xf32>
    %58 = arith.addf %55, %57 : vector<16x64xf32>
    %cst_60 = arith.constant 0.000000e+00 : f32
    %59 = vector.broadcast %cst_60 : f32 to vector<16x64xf32>
    %60 = arith.maximumf %58, %59 : vector<16x64xf32>
    %c0_61 = arith.constant 0 : index
    %c0_62 = arith.constant 0 : index
    %61 = vector.load %arg7[%c0_61, %c0_62] : memref<32x64xf32, #tpu.memory_space<vmem>>, vector<32x64xf32>
    %cst_63 = arith.constant dense<0.000000e+00> : vector<16x64xf32>
    %62 = tpu.matmul %10, %61, %cst_63 {dimension_numbers = #tpu.dot_dimension_numbers<[1], [0], [0], [1], [0, 0, 1, 1], [], []>} : vector<16x32xf32>, vector<32x64xf32>, vector<16x64xf32> -> vector<16x64xf32>
    %c0_64 = arith.constant 0 : index
    %c0_65 = arith.constant 0 : index
    %63 = vector.load %arg8[%c0_64, %c0_65] : memref<1x64xf32, #tpu.memory_space<vmem>>, vector<1x64xf32>
    %64 = vector.broadcast %63 : vector<1x64xf32> to vector<16x64xf32>
    %65 = arith.addf %62, %64 : vector<16x64xf32>
    %66 = arith.addf %60, %65 : vector<16x64xf32>
    %c0_66 = arith.constant 0 : index
    %c0_67 = arith.constant 0 : index
    %67 = vector.load %arg9[%c0_66, %c0_67] : memref<16x64xf32, #tpu.memory_space<vmem>>, vector<16x64xf32>
    tpu.vector_store %arg9[%c0_66, %c0_67], %66 {strides = array<i32>} : memref<16x64xf32, #tpu.memory_space<vmem>>, vector<16x64xf32>,
    return
  }
  func.func @transform_0(%arg0: i32) -> (i32, i32, i32) {
    %c0_i32 = arith.constant 0 : i32
    %c0_i32_0 = arith.constant 0 : i32
    %c0_i32_1 = arith.constant 0 : i32
    return %c0_i32, %arg0, %c0_i32_0 : i32, i32, i32
  }
  func.func @transform_1(%arg0: i32) -> (i32, i32, i32) {
    %c0_i32 = arith.constant 0 : i32
    %c0_i32_0 = arith.constant 0 : i32
    %c0_i32_1 = arith.constant 0 : i32
    %c0_i32_2 = arith.constant 0 : i32
    return %c0_i32, %c0_i32_0, %c0_i32_1 : i32, i32, i32
  }
  func.func @transform_2(%arg0: i32) -> (i32, i32, i32) {
    %c0_i32 = arith.constant 0 : i32
    %c0_i32_0 = arith.constant 0 : i32
    %c0_i32_1 = arith.constant 0 : i32
    %c0_i32_2 = arith.constant 0 : i32
    return %c0_i32, %c0_i32_0, %c0_i32_1 : i32, i32, i32
  }
  func.func @transform_3(%arg0: i32) -> (i32, i32) {
    %c0_i32 = arith.constant 0 : i32
    %c0_i32_0 = arith.constant 0 : i32
    %c0_i32_1 = arith.constant 0 : i32
    return %c0_i32, %c0_i32_0 : i32, i32
  }
  func.func @transform_4(%arg0: i32) -> (i32, i32, i32) {
    %c0_i32 = arith.constant 0 : i32
    %c0_i32_0 = arith.constant 0 : i32
    %c0_i32_1 = arith.constant 0 : i32
    %c0_i32_2 = arith.constant 0 : i32
    return %c0_i32, %c0_i32_0, %c0_i32_1 : i32, i32, i32
  }
  func.func @transform_5(%arg0: i32) -> (i32, i32) {
    %c0_i32 = arith.constant 0 : i32
    %c0_i32_0 = arith.constant 0 : i32
    %c0_i32_1 = arith.constant 0 : i32
    return %c0_i32, %c0_i32_0 : i32, i32
  }
  func.func @transform_6(%arg0: i32) -> (i32, i32) {
    %c0_i32 = arith.constant 0 : i32
    %c0_i32_0 = arith.constant 0 : i32
    %c0_i32_1 = arith.constant 0 : i32
    return %c0_i32, %c0_i32_0 : i32, i32
  }
  func.func @transform_7(%arg0: i32) -> (i32, i32) {
    %c0_i32 = arith.constant 0 : i32
    %c0_i32_0 = arith.constant 0 : i32
    %c0_i32_1 = arith.constant 0 : i32
    return %c0_i32, %c0_i32_0 : i32, i32
  }
  func.func @transform_8(%arg0: i32) -> (i32, i32) {
    %c0_i32 = arith.constant 0 : i32
    %c0_i32_0 = arith.constant 0 : i32
    return %arg0, %c0_i32 : i32, i32
  }
}

</mosaic_0001>

<bundles_post_ra>
// kernel: tpu_custom_call.1
= control target key start
LH: loop header
LB: loop body
LE: loop exit
PB: predicated region body
PF: predicated region fallthrough
CT: control target
= control target key end

     0   :  { %13 = vsyncpa [#allocation3], 0  ;;  %s1971_s0 = inlined_call_operand.hbm [shape: f32[4,16,32], index: 0, kind: input, shape index: {}]   ;;  %s1972_s1 = inlined_call_operand.hbm [shape: f32[3,16,16], index: 1, kind: input, shape index: {}]   ;;  %s1973_s2 = inlined_call_operand.hbm [shape: f32[3,32,64], index: 2, kind: input, shape index: {}]   ;;  %s1974_s3 = inlined_call_operand.vmem [shape: f32[1,64], index: 3, kind: input, shape index: {}]   ;;  %s1975_s4 = inlined_call_operand.hbm [shape: f32[3,64,64], index: 4, kind: input, shape index: {}]   ;;  %s1976_s5 = inlined_call_operand.vmem [shape: f32[1,64], index: 5, kind: input, shape index: {}]   ;;  %s1977_s6 = inlined_call_operand.hbm [shape: f32[32,64], index: 6, kind: input, shape index: {}]   ;;  %s1978_s7 = inlined_call_operand.vmem [shape: f32[1,64], index: 7, kind: input, shape index: {}]   ;;  %s1979_s8 = inlined_call_operand.hbm [shape: f32[16,64], index: 8, kind: output, shape index: {}]  }
   0x1   :  { %14 = vsyncpa [#allocation6], 0 }
   0x2   :  { %15 = vsyncpa [#allocation9], 0 }
   0x3   :  { %16 = vsyncpa [#allocation4], 0  ;;  %s1741_s27 = smov [#allocation5]   ;;  %s1742_s29 = smov [#allocation8]  }
   0x4   :  { %s34_s28 = sshll.u32 %s1741_s27, 4  ;;  %s60_s30 = sshll.u32 %s1742_s29, 4  ;;  %s35_s28 = int_to_ptr.vmem [resolvable:$true] %s34_s28  ;;  %s1794_s30 = int_to_ptr.vmem [resolvable:$true] %s60_s30 }
   0x5   :  { %s1601_s11 = scalar_lea.hbm %s1972_s1, 768 }
   0x6   :  { %p1602_p0 = scmp.ne.s32.totalorder %s1972_s1, %s1601_s11  ;;  %p1605_p1 = scmp.lt.u32.totalorder %s1601_s11, %s1972_s1 }
   0x8   :  { %p1607_p2 = pnand %p1605_p1, %p1602_p0 }
   0xa   :  { %1610 = shalt.err (!%p1607_p2)
}
   0xb   :  { %s1611_s16 = scalar_lea.vmem %s35_s28, 768  ;;  %p1616_p4 = scmp.lt.s32.totalorder %s35_s28, %s35_s28 }
   0xc   :  { %p1612_p3 = scmp.ne.s32.totalorder %s35_s28, %s1611_s16  ;;  %p1617_p5 = scmp.lt.s32.totalorder %s1611_s16, %s1611_s16 }
   0xe   :  { %p1618_p6 = por %p1617_p5, %p1616_p4 }
  0x10   :  { %p1619_p7 = pnand %p1618_p6, %p1612_p3 }
  0x12   :  { %1622 = shalt.err (!%p1619_p7)
}
  0x13   :  { %s1743_s17 = smov 128   ;;  %s1744_s18 = smov 8  }
  0x14   :  { %40 = dma.hbm_to_vmem [thread:$0]  %s1972_s1, 768, %s35_s28, [#allocation6], %s1743_s17, %s1743_s17, %s1744_s18  }
  0x15   :  { %s1623_s23 = scalar_lea.hbm %s1975_s4, 3072 }
  0x16   :  { %p1624_p8 = scmp.ne.s32.totalorder %s1975_s4, %s1623_s23  ;;  %p1627_p9 = scmp.lt.u32.totalorder %s1623_s23, %s1975_s4 }
  0x18   :  { %p1629_p10 = pnand %p1627_p9, %p1624_p8 }
  0x1a   :  { %1632 = shalt.err (!%p1629_p10)
}
  0x1b   :  { %s1633_s29 = scalar_lea.vmem %s1794_s30, 3072  ;;  %p1638_p12 = scmp.lt.s32.totalorder %s1794_s30, %s1794_s30 }
  0x1c   :  { %p1634_p11 = scmp.ne.s32.totalorder %s1794_s30, %s1633_s29  ;;  %p1639_p13 = scmp.lt.s32.totalorder %s1633_s29, %s1633_s29 }
  0x1e   :  { %p1640_p0 = por %p1639_p13, %p1638_p12 }
  0x20   :  { %p1641_p1 = pnand %p1640_p0, %p1634_p11 }
  0x22   :  { %1644 = shalt.err (!%p1641_p1)
}
  0x23   :  { %66 = dma.hbm_to_vmem [thread:$0]  %s1975_s4, 3072, %s1794_s30, [#allocation9], %s1743_s17, %s1743_s17, %s1744_s18  }
  0x24   :  { %s1745_s9 = smov [#allocation2]   ;;  %s1746_s11 = smov [#allocation7]  }
  0x25   :  { %s22_s10 = sshll.u32 %s1745_s9, 4  ;;  %s46_s12 = sshll.u32 %s1746_s11, 4  ;;  %s23_s10 = int_to_ptr.vmem [resolvable:$true] %s22_s10  ;;  %s1831_s12 = int_to_ptr.vmem [resolvable:$true] %s46_s12 }
  0x26   :  { %s1645_s15 = scalar_lea.hbm %s1971_s0, 1024 }
  0x27   :  { %p1646_p2 = scmp.ne.s32.totalorder %s1971_s0, %s1645_s15  ;;  %p1649_p3 = scmp.lt.u32.totalorder %s1645_s15, %s1971_s0 }
  0x29   :  { %p1651_p4 = pnand %p1649_p3, %p1646_p2 }
  0x2b   :  { %1654 = shalt.err (!%p1651_p4)
}
  0x2c   :  { %s1655_s4 = scalar_lea.vmem %s23_s10, 1024  ;;  %p1660_p6 = scmp.lt.s32.totalorder %s23_s10, %s23_s10 }
  0x2d   :  { %p1656_p5 = scmp.ne.s32.totalorder %s23_s10, %s1655_s4  ;;  %p1661_p7 = scmp.lt.s32.totalorder %s1655_s4, %s1655_s4 }
  0x2f   :  { %p1662_p8 = por %p1661_p7, %p1660_p6 }
  0x31   :  { %p1663_p9 = pnand %p1662_p8, %p1656_p5 }
  0x33   :  { %1666 = shalt.err (!%p1663_p9)
}
  0x34   :  { %28 = dma.hbm_to_vmem [thread:$0]  %s1971_s0, 1024, %s23_s10, [#allocation3], %s1743_s17, %s1743_s17, %s1744_s18  }
  0x35   :  { %s1667_s25 = scalar_lea.hbm %s1973_s2, 1536 }
  0x36   :  { %p1668_p10 = scmp.ne.s32.totalorder %s1973_s2, %s1667_s25  ;;  %p1671_p11 = scmp.lt.u32.totalorder %s1667_s25, %s1973_s2 }
  0x38   :  { %p1673_p12 = pnand %p1671_p11, %p1668_p10 }
  0x3a   :  { %1676 = shalt.err (!%p1673_p12)
}
  0x3b   :  { %s1677_s28 = scalar_lea.vmem %s1831_s12, 1536  ;;  %p1682_p0 = scmp.lt.s32.totalorder %s1831_s12, %s1831_s12 }
  0x3c   :  { %p1678_p13 = scmp.ne.s32.totalorder %s1831_s12, %s1677_s28  ;;  %p1683_p1 = scmp.lt.s32.totalorder %s1677_s28, %s1677_s28 }
  0x3e   :  { %p1684_p2 = por %p1683_p1, %p1682_p0 }
  0x40   :  { %p1685_p3 = pnand %p1684_p2, %p1678_p13 }
  0x42   :  { %1688 = shalt.err (!%p1685_p3)
}
  0x43   :  { %52 = dma.hbm_to_vmem [thread:$0]  %s1973_s2, 1536, %s1831_s12, [#allocation6], %s1743_s17, %s1743_s17, %s1744_s18  }
  0x44   :  { %s1747_s10 = smov [#allocation10]   ;;  %s1689_s15 = scalar_lea.hbm %s1977_s6, 512 }
  0x45   :  { %s74_s11 = sshll.u32 %s1747_s10, 4  ;;  %p1690_p4 = scmp.ne.s32.totalorder %s1977_s6, %s1689_s15  ;;  %s75_s11 = int_to_ptr.vmem [resolvable:$true] %s74_s11 }
  0x46   :  { %p1693_p5 = scmp.lt.u32.totalorder %s1689_s15, %s1977_s6 }
  0x48   :  { %p1695_p6 = pnand %p1693_p5, %p1690_p4 }
  0x4a   :  { %1698 = shalt.err (!%p1695_p6)
}
  0x4b   :  { %s1699_s4 = scalar_lea.vmem %s75_s11, 512  ;;  %p1704_p8 = scmp.lt.s32.totalorder %s75_s11, %s75_s11 }
  0x4c   :  { %p1700_p7 = scmp.ne.s32.totalorder %s75_s11, %s1699_s4  ;;  %p1705_p9 = scmp.lt.s32.totalorder %s1699_s4, %s1699_s4 }
  0x4e   :  { %p1706_p10 = por %p1705_p9, %p1704_p8 }
  0x50   :  { %p1707_p11 = pnand %p1706_p10, %p1700_p7 }
  0x52   :  { %1710 = shalt.err (!%p1707_p11)
}
  0x53   :  { %80 = dma.hbm_to_vmem [thread:$0]  %s1977_s6, 512, %s75_s11, [#allocation9], %s1743_s17, %s1743_s17, %s1744_s18  }
  0x54   :  { %1733 = dma.done.wait [#allocation3], 1024  }
  0x55   :  { %1734 = vsyncadd [#allocation3], 4294966272 }
  0x56   :  { %1735 = dma.done.wait [#allocation6], 2304  }
  0x57   :  { %1736 = vsyncadd [#allocation6], 4294964992 }
  0x58   :  { %1737 = dma.done.wait [#allocation9], 3584  }
  0x59   :  { %1738 = vsyncadd [#allocation9], 4294963712  ;;  %v204_v0 = vld [vmem:[#allocation7 + $0x20] sm:$0xff]  ;;  %v205_v1 = vld [vmem:[#allocation7 + $0x28] sm:$0xff]  ;;  %vm119_vm0 = vcmask 261120   ;;  %vm286_vm1 = vcmask 130048  }
  0x5a   :  { %v206_v2 = vld [vmem:[#allocation7 + $0x30] sm:$0xff]  ;;  %v1489_v3 = vpack.c.bf16 %v205_v1, %v204_v0  ;;  %v207_v4 = vld [vmem:[#allocation7 + $0x38] sm:$0xff]  ;;  %v115_v5 = vld [vmem:[#allocation7] sm:$0xff]  ;;  %vm634_vm2 = vcmask 523264   ;;  %s1748_s25 = smov [#allocation11]  }
  0x5b   :  { %v116_v6 = vld [vmem:[#allocation7 + $0x8] sm:$0xff]  ;;  %v1493_v7 = vpack.c.bf16 %v207_v4, %v206_v2  ;;  %v98_v9 = vld [vmem:[#allocation2] sm:$0xff]  ;;  %v101_v10 = vld [vmem:[#allocation2 + $0x10] sm:$0xff]  ;;  %s1217_s26 = sshll.u32 %s1748_s25, 4  ;;  %s1218_s26 = int_to_ptr.vmem [resolvable:$true] %s1217_s26 }
  0x5c   :  { %v1481_v8 = vpack.c.bf16 %v116_v6, %v115_v5  ;;  %v106_v11 = vld [vmem:[#allocation2 + $0x20] sm:$0xff]  ;;  %1490 = vmatprep.subr.bf16.mxu1 %v1489_v3  ;;  %v103_v12 = vmax.f32 %v98_v9, %v101_v10  ;;  %v109_v13 = vld [vmem:[#allocation2 + $0x30] sm:$0xff]  ;;  %v99_v14 = vld [vmem:[#allocation2 + $0x8] sm:$0xff]  ;;  %p1716_p13 = scmp.lt.s32.totalorder %s1218_s26, %s1218_s26 }
  0x5d   :  { %v102_v15 = vld [vmem:[#allocation2 + $0x18] sm:$0xff]  ;;  %1492 = vmatpush3.bf16.msra.mxu1 %v1489_v3  ;;  %v111_v16 = vmax.f32 %v106_v11, %v109_v13  ;;  %v107_v18 = vld [vmem:[#allocation2 + $0x28] sm:$0xff]  ;;  %v117_v20 = vld [vmem:[#allocation7 + $0x10] sm:$0xff] }
  0x5e   :  { %1482 = vmatprep.subr.bf16.mxu0 %v1481_v8  ;;  %v104_v17 = vmax.f32 %v99_v14, %v102_v15  ;;  %v110_v19 = vld [vmem:[#allocation2 + $0x38] sm:$0xff]  ;;  %1494 = vmatprep.subr.bf16.mxu1 %v1493_v7  ;;  %v118_v22 = vld [vmem:[#allocation7 + $0x18] sm:$0xff]  ;;  %v450_v23 = vld [vmem:[#allocation7 + $0x40] sm:$0xff] }
  0x5f   :  { %1484 = vmatpush3.bf16.msra.mxu0 %v1481_v8  ;;  %v112_v21 = vmax.f32 %v107_v18, %v110_v19  ;;  %v451_v24 = vld [vmem:[#allocation7 + $0x48] sm:$0xff]  ;;  %v1883_v25 = vmax.f32 %v103_v12, %v111_v16  ;;  %v1485_v26 = vpack.c.bf16 %v118_v22, %v117_v20  ;;  %v452_v28 = vld [vmem:[#allocation7 + $0x50] sm:$0xff]  ;;  %v453_v29 = vld [vmem:[#allocation7 + $0x58] sm:$0xff] }
  0x60   :  { %v1505_v27 = vpack.c.bf16 %v451_v24, %v450_v23  ;;  %v1509_v31 = vpack.c.bf16 %v453_v29, %v452_v28  ;;  %v1899_v32 = vld [vmem:[#allocation5 + $0x10] sm:$0xff]  ;;  %v627_v34 = vld [vmem:[#allocation8 + $0x8] sm:$0xff]  ;;  %v628_v36 = vld [vmem:[#allocation8 + $0x10] sm:$0xff] }
  0x61   :  { %v1885_v30 = vmax.f32 %v104_v17, %v112_v21  ;;  %1496 = vmatpush3.bf16.msra.mxu1 %v1493_v7  ;;  %1357 = vmatprep.mubr.msk.f32.mxu1 %vm119_vm0, %v1883_v25  ;;  %v626_v33 = vld [vmem:[#allocation8] sm:$0xff]  ;;  %v629_v37 = vld [vmem:[#allocation8 + $0x18] sm:$0xff]  ;;  %v631_v40 = vld [vmem:[#allocation8 + $0x28] sm:$0xff] }
  0x62   :  { %1486 = vmatprep.subr.bf16.mxu0 %v1485_v26  ;;  %1346 = vmatprep.mubr.msk.f32.mxu0 %vm119_vm0, %v1883_v25  ;;  %v1517_v35 = vpack.c.bf16 %v627_v34, %v626_v33  ;;  %v1521_v38 = vpack.c.bf16 %v629_v37, %v628_v36  ;;  %v630_v39 = vld [vmem:[#allocation8 + $0x20] sm:$0xff]  ;;  %v1903_v48 = vld [vmem:[#allocation5 + $0x18] sm:$0xff]  ;;  %v1905_v49 = vld [vmem:[#allocation5] sm:$0xff] }
  0x63   :  { %1488 = vmatpush3.bf16.msra.mxu0 %v1485_v26  ;;  %1506 = vmatprep.subr.bf16.mxu1 %v1505_v27  ;;  %v1525_v41 = vpack.c.bf16 %v631_v40, %v630_v39  ;;  %v717_v53 = vld [vmem:[#allocation8 + $0x40] sm:$0xff]  ;;  %v718_v54 = vld [vmem:[#allocation8 + $0x48] sm:$0xff]  ;;  %v1911_v55 = vld [vmem:[#allocation5 + $0x8] sm:$0xff] }
  0x64   :  { %1358 = vmatmul.mubr.msk.f32.vlgmr.msra.gmra.mrb[0].mxu1 %vm119_vm0, %v1885_v30  ;;  %v1913_v56 = vld [vmem:[#allocation5 + $0x20] sm:$0xff]  ;;  %v1533_v57 = vpack.c.bf16 %v718_v54, %v717_v53  ;;  %v720_v59 = vld [vmem:[#allocation8 + $0x58] sm:$0xff]  ;;  %v721_v62 = vld [vmem:[#allocation8 + $0x60] sm:$0xff] }
  0x65   :  { %1508 = vmatpush3.bf16.msra.mxu1 %v1505_v27  ;;  %1382 = vmatprep.mubr.msk.f32.mxu1 %vm119_vm0, %v1883_v25  ;;  %v719_v58 = vld [vmem:[#allocation8 + $0x50] sm:$0xff]  ;;  %v1919_v60 = vld [vmem:[#allocation5 + $0x28] sm:$0xff]  ;;  %v722_v63 = vld [vmem:[#allocation8 + $0x68] sm:$0xff] }
  0x66   :  { %1347 = vmatmul.mubr.msk.f32.vlgmr.msra.gmra.mrb[0].mxu0 %vm119_vm0, %v1885_v30  ;;  %1510 = vmatprep.subr.bf16.mxu1 %v1509_v31  ;;  %v1537_v61 = vpack.c.bf16 %v720_v59, %v719_v58  ;;  %v1541_v0 = vpack.c.bf16 %v722_v63, %v721_v62  ;;  %v723_v1 = vld [vmem:[#allocation8 + $0x70] sm:$0xff]  ;;  %v724_v2 = vld [vmem:[#allocation8 + $0x78] sm:$0xff]  ;;  %v951_v7 = vld [vmem:[#allocation8 + $0x80] sm:$0xff] }
  0x67   :  { %1364 = vmatprep.mubr.msk.f32.mxu0 %vm286_vm1, %v1899_v32  ;;  %v1545_v3 = vpack.c.bf16 %v724_v2, %v723_v1  ;;  %v632_v4 = vld [vmem:[#allocation8 + $0x30] sm:$0xff]  ;;  %v633_v5 = vld [vmem:[#allocation8 + $0x38] sm:$0xff]  ;;  %v952_v8 = vld [vmem:[#allocation8 + $0x88] sm:$0xff] }
  0x68   :  { %v1529_v6 = vpack.c.bf16 %v633_v5, %v632_v4  ;;  %v1557_v9 = vpack.c.bf16 %v952_v8, %v951_v7  ;;  %v1243_v10 = vld [vmem:[%s1974_s3] ss:$0 sm:$0xff]  ;;  %v954_v16 = vld [vmem:[#allocation8 + $0x98] sm:$0xff]  ;;  %v955_v20 = vld [vmem:[#allocation8 + $0xa0] sm:$0xff] }
  0x69   :  { %1512 = vmatpush3.bf16.msra.mxu1 %v1509_v31  ;;  %v953_v15 = vld [vmem:[#allocation8 + $0x90] sm:$0xff]  ;;  %v956_v21 = vld [vmem:[#allocation8 + $0xa8] sm:$0xff]  ;;  %v958_v24 = vld [vmem:[#allocation8 + $0xb8] sm:$0xff] }
  0x6a   :  { %1518 = vmatprep.subr.bf16.mxu1 %v1517_v35  ;;  %v1561_v19 = vpack.c.bf16 %v954_v16, %v953_v15  ;;  %v1565_v22 = vpack.c.bf16 %v956_v21, %v955_v20  ;;  %v957_v23 = vld [vmem:[#allocation8 + $0xb0] sm:$0xff] }
  0x6b   :  { %v1569_v26 = vpack.c.bf16 %v958_v24, %v957_v23  ;;  %v1124_v40 = vld [vmem:[#allocation10 + $0x10] sm:$0xff] }
  0x6c   :  { %1383 = vmatmul.mubr.msk.f32.vlgmr.msra.gmra.mrb[2].mxu1 %vm119_vm0, %v1885_v30 }
  0x6d   :  { %1520 = vmatpush3.bf16.msra.mxu1 %v1517_v35  ;;  %v1123_v35 = vld [vmem:[#allocation10 + $0x8] sm:$0xff] }
  0x6e   :  { %1522 = vmatprep.subr.bf16.mxu1 %v1521_v38 }
  0x71   :  { %1524 = vmatpush3.bf16.msra.mxu1 %v1521_v38 }
  0x72   :  { %1526 = vmatprep.subr.bf16.mxu1 %v1525_v41 }
  0x75   :  { %1528 = vmatpush3.bf16.msra.mxu1 %v1525_v41  ;;  %v1125_v41 = vld [vmem:[#allocation10 + $0x18] sm:$0xff] }
  0x76   :  { %1530 = vmatprep.subr.bf16.mxu1 %v1529_v6 }
  0x79   :  { %1532 = vmatpush3.bf16.msra.mxu1 %v1529_v6 }
 0x137   :  { %v1359_v42 = vpop.f32.mrb[0].mxu1 }
 0x138   :  { %v274_v43 = vpop.f32.mrb[1].mxu1 }
 0x139   :  { %v1497_v44 = vpack.c.bf16 %v1359_v42, %v274_v43  ;;  %v1348_v45 = vpop.f32.mrb[0].mxu0  ;;  %v1581_v42 = vpack.c.bf16 %v1125_v41, %v1124_v40 }
 0x13a   :  { %v192_v46 = vpop.f32.mrb[1].mxu0 }
 0x13b   :  { %1498 = vmatprep.subr.bf16.mxu0 %v1497_v44  ;;  %v1501_v47 = vpack.c.bf16 %v1348_v45, %v192_v46  ;;  %v1256_v45 = vld [vmem:[%s1976_s5] ss:$0 sm:$0xff]  ;;  %s1711_s5 = scalar_lea.vmem %s1218_s26, 256 }
 0x13c   :  { %1500 = vmatpush3.bf16.msra.mxu0 %v1497_v44  ;;  %p1712_p12 = scmp.ne.s32.totalorder %s1218_s26, %s1711_s5  ;;  %p1717_p0 = scmp.lt.s32.totalorder %s1711_s5, %s1711_s5 }
 0x13d   :  { %1502 = vmatprep.subr.bf16.mxu0 %v1501_v47 }
 0x13e   :  { %p1718_p1 = por %p1717_p0, %p1716_p13 }
 0x13f   :  { %1365 = vmatmul.mubr.msk.f32.vlgmr.msra.gmra.mrb[2].mxu0 %vm286_vm1, %v1903_v48  ;;  %v1384_v50 = vpop.f32.mrb[2].mxu1 }
 0x140   :  { %1504 = vmatpush3.bf16.msra.mxu0 %v1501_v47  ;;  %v520_v51 = vpop.f32.mrb[3].mxu1  ;;  %1371 = vmatprep.mubr.msk.f32.mxu0 %vm286_vm1, %v1905_v49  ;;  %p1719_p2 = pnand %p1718_p1, %p1712_p12 }
 0x141   :  { %v1513_v52 = vpack.c.bf16 %v1384_v50, %v520_v51 }
 0x143   :  { %1514 = vmatprep.subr.bf16.mxu0 %v1513_v52 }
 0x147   :  { %1372 = vmatmul.mubr.msk.f32.vlgmr.msra.gmra.mrb[2].mxu0 %vm286_vm1, %v1911_v55 }
 0x148   :  { %1516 = vmatpush3.bf16.msra.mxu0 %v1513_v52  ;;  %1389 = vmatprep.mubr.msk.f32.mxu0 %vm286_vm1, %v1913_v56 }
 0x149   :  { %1534 = vmatprep.subr.bf16.mxu0 %v1533_v57 }
 0x14f   :  { %1390 = vmatmul.mubr.msk.f32.vlgmr.msra.gmra.mrb[2].mxu0 %vm286_vm1, %v1919_v60 }
 0x150   :  { %1536 = vmatpush3.bf16.msra.mxu0 %v1533_v57 }
 0x151   :  { %1538 = vmatprep.subr.bf16.mxu0 %v1537_v61 }
 0x154   :  { %1540 = vmatpush3.bf16.msra.mxu0 %v1537_v61 }
 0x155   :  { %1542 = vmatprep.subr.bf16.mxu0 %v1541_v0 }
 0x158   :  { %1544 = vmatpush3.bf16.msra.mxu0 %v1541_v0 }
 0x159   :  { %1546 = vmatprep.subr.bf16.mxu0 %v1545_v3 }
 0x15c   :  { %1548 = vmatpush3.bf16.msra.mxu0 %v1545_v3 }
 0x15d   :  { %1558 = vmatprep.subr.bf16.mxu0 %v1557_v9 }
 0x222   :  { %v1391_v11 = vpop.f32.mrb[2].mxu0 }
 0x223   :  { %v623_v12 = vadd.f32 %v1391_v11, %v1243_v10  ;;  %v604_v13 = vpop.f32.mrb[3].mxu0 }
 0x224   :  { %v622_v14 = vadd.f32 %v1243_v10, %v604_v13 }
 0x225   :  { %v625_v18 = vmax.f32 %v623_v12, 0.0 }
 0x226   :  { %v624_v17 = vmax.f32 %v622_v14, 0.0 }
 0x228   :  { %1408 = vmatprep.mubr.msk.f32.mxu1 %vm634_vm2, %v624_v17  ;;  %1427 = vmatprep.mubr.msk.f32.mxu0 %vm634_vm2, %v624_v17 }
 0x229   :  { %1409 = vmatmul.mubr.msk.f32.vlgmr.msra.gmra.mrb[4].mxu1 %vm634_vm2, %v625_v18  ;;  %1428 = vmatmul.mubr.msk.f32.vlgmr.msra.gmra.mrb[4].mxu0 %vm634_vm2, %v625_v18 }
 0x22a   :  { %1560 = vmatpush3.bf16.msra.mxu0 %v1557_v9  ;;  %1460 = vmatprep.mubr.msk.f32.mxu0 %vm634_vm2, %v624_v17 }
 0x22b   :  { %1562 = vmatprep.subr.bf16.mxu0 %v1561_v19  ;;  %1434 = vmatprep.mubr.msk.f32.mxu1 %vm286_vm1, %v1899_v32  ;;  %v1122_v32 = vld [vmem:[#allocation10] sm:$0xff] }
 0x22c   :  { %v1577_v39 = vpack.c.bf16 %v1123_v35, %v1122_v32 }
 0x22e   :  { %1564 = vmatpush3.bf16.msra.mxu0 %v1561_v19 }
 0x22f   :  { %1566 = vmatprep.subr.bf16.mxu0 %v1565_v22 }
 0x232   :  { %1568 = vmatpush3.bf16.msra.mxu0 %v1565_v22 }
 0x233   :  { %1570 = vmatprep.subr.bf16.mxu0 %v1569_v26 }
 0x236   :  { %1572 = vmatpush3.bf16.msra.mxu0 %v1569_v26 }
 0x239   :  { %1461 = vmatmul.mubr.msk.f32.vlgmr.msra.gmra.mrb[6].mxu0 %vm634_vm2, %v625_v18 }
 0x2fc   :  { %v1410_v27 = vpop.f32.mrb[4].mxu1  ;;  %v1429_v28 = vpop.f32.mrb[4].mxu0 }
 0x2fd   :  { %v707_v29 = vpop.f32.mrb[5].mxu1  ;;  %v791_v31 = vpop.f32.mrb[5].mxu0 }
 0x2fe   :  { %v1553_v33 = vpack.c.bf16 %v1410_v27, %v707_v29  ;;  %v1549_v34 = vpack.c.bf16 %v1429_v28, %v791_v31 }
 0x300   :  { %1550 = vmatprep.subr.bf16.mxu1 %v1549_v34 }
 0x301   :  { %1552 = vmatpush3.bf16.msra.mxu1 %v1549_v34 }
 0x302   :  { %1554 = vmatprep.subr.bf16.mxu1 %v1553_v33 }
 0x304   :  { %1435 = vmatmul.mubr.msk.f32.vlgmr.msra.gmra.mrb[6].mxu1 %vm286_vm1, %v1903_v48  ;;  %v1257_v48 = vld [vmem:[%s1978_s7] ss:$0 sm:$0xff] }
 0x305   :  { %1556 = vmatpush3.bf16.msra.mxu1 %v1553_v33  ;;  %1441 = vmatprep.mubr.msk.f32.mxu1 %vm286_vm1, %v1905_v49 }
 0x30c   :  { %v1462_v36 = vpop.f32.mrb[6].mxu0  ;;  %1442 = vmatmul.mubr.msk.f32.vlgmr.msra.gmra.mrb[6].mxu1 %vm286_vm1, %v1911_v55 }
 0x30d   :  { %v1025_v37 = vpop.f32.mrb[7].mxu0  ;;  %1467 = vmatprep.mubr.msk.f32.mxu1 %vm286_vm1, %v1913_v56 }
 0x30e   :  { %v1573_v38 = vpack.c.bf16 %v1462_v36, %v1025_v37 }
 0x310   :  { %1574 = vmatprep.subr.bf16.mxu1 %v1573_v38 }
 0x311   :  { %1576 = vmatpush3.bf16.msra.mxu1 %v1573_v38 }
 0x312   :  { %1578 = vmatprep.subr.bf16.mxu1 %v1577_v39 }
 0x314   :  { %1468 = vmatmul.mubr.msk.f32.vlgmr.msra.gmra.mrb[6].mxu1 %vm286_vm1, %v1919_v60 }
 0x315   :  { %1580 = vmatpush3.bf16.msra.mxu1 %v1577_v39  ;;  %1478 = vmatprep.mubr.msk.f32.mxu1 %vm119_vm0, %v1883_v25 }
 0x316   :  { %1582 = vmatprep.subr.bf16.mxu1 %v1581_v42 }
 0x319   :  { %1584 = vmatpush3.bf16.msra.mxu1 %v1581_v42 }
 0x31c   :  { %1479 = vmatmul.mubr.msk.f32.vlgmr.msra.gmra.mrb[8].mxu1 %vm119_vm0, %v1885_v30 }
 0x3e7   :  { %v1469_v43 = vpop.f32.mrb[6].mxu1 }
 0x3e8   :  { %v1100_v44 = vpop.f32.mrb[7].mxu1  ;;  %v1119_v46 = vadd.f32 %v1469_v43, %v1256_v45 }
 0x3e9   :  { %v1118_v47 = vadd.f32 %v1256_v45, %v1100_v44 }
 0x3ea   :  { %v1121_v50 = vmax.f32 %v1119_v46, 0.0 }
 0x3eb   :  { %v1120_v52 = vmax.f32 %v1118_v47, 0.0 }
 0x3ef   :  { %v1480_v49 = vpop.f32.mrb[8].mxu1 }
 0x3f0   :  { %v1205_v25 = vadd.f32 %v1480_v49, %v1257_v48  ;;  %v1199_v51 = vpop.f32.mrb[9].mxu1 }
 0x3f1   :  { %v1200_v30 = vadd.f32 %v1257_v48, %v1199_v51 }
 0x3f2   :  { %v1209_v53 = vadd.f32 %v1205_v25, %v1121_v50 }
 0x3f3   :  { %v1208_v54 = vadd.f32 %v1200_v30, %v1120_v52 }
 0x3f4   :  { %1211 = vst.msk [vmem:[#allocation11 + $0x8] sm:$0xff] %vm634_vm2, %v1209_v53 }
 0x3f5   :  { %1210 = vst.msk [vmem:[#allocation11] sm:$0xff] %vm634_vm2, %v1208_v54 }
 0x3f6   :  { %1722 = shalt.err (!%p1719_p2)
}
 0x3f7   :  { %s1723_s29 = scalar_lea.hbm %s1979_s8, 256 }
 0x3f8   :  { %p1724_p3 = scmp.ne.s32.totalorder %s1979_s8, %s1723_s29  ;;  %p1727_p4 = scmp.lt.u32.totalorder %s1723_s29, %s1979_s8 }
 0x3fa   :  { %p1729_p5 = pnand %p1727_p4, %p1724_p3 }
 0x3fc   :  { %1732 = shalt.err (!%p1729_p5)
}
 0x3fd   :  { %1223 = dma.vmem_to_hbm [thread:$0]  %s1218_s26, 256, %s1979_s8, [#allocation4], %s1743_s17, %s1743_s17, %s1744_s18  }
 0x3fe   :  { %1739 = dma.done.wait [#allocation4], 256  }
 0x3ff   :  { %1740 = vsyncadd [#allocation4], 4294967040 }
 0x400   :  { %1227 = vsyncpa [#allocation3], 1 }
 0x401   :  { %1228 = vsyncpa [#allocation6], 1 }
 0x402   :  { %1229 = vsyncpa [#allocation9], 1 }
 0x403   :  { %1230 = vsyncpa [#allocation4], 1 }

</bundles_post_ra>
